<compile_context>
chip_gen: v6e
topology: v6e:2x2x1
jax: 0.10.0
libtpu: 0.0.40
codegen_flags: <defaults>
</compile_context>

<pallas_src>
import functools

import jax
import jax.numpy as jnp
from jax.experimental import pallas as pl
from jax.experimental.pallas import tpu as pltpu


def _round_up(n, m):
    return ((n + m - 1) // m) * m


def _vmem_limit_bytes():
    """Generation-aware VMEM scoped limit with headroom for compiler scratch."""
    phys = None
    try:
        info = pltpu.get_tpu_info()
        phys = getattr(info, "vmem_capacity_bytes", None)
    except Exception:
        phys = None
    if not phys:
        phys = 64 * 1024 * 1024          # conservative fallback: v7x per-TC VMEM
    return max(32 * 1024 * 1024, int(phys) - 16 * 1024 * 1024)


def choose_block_h(dim, hidden, *, weight_bytes=2, budget_frac=0.25):
    """Largest block_h (multiple of 128, divides hidden) whose double-buffered
    weight tiles ([W1_j|W3_j] + W2_j) fit within budget_frac of this chip's VMEM."""
    budget = _vmem_limit_bytes() * budget_frac
    best = None
    for bh in range(128, hidden + 1, 128):
        if hidden % bh:
            continue
        tile_bytes = 2 * (dim * 2 * bh + bh * dim) * weight_bytes   # 2 = double buffer
        if tile_bytes <= budget:
            best = bh
    if best is None:
        assert hidden % 128 == 0, "hidden_dim must be a multiple of 128"
        best = 128
    return best


def _ffn_kernel(x_ref, w13_ref, w2_ref, o_ref, acc_ref, xbf_ref):
    """Grid = (token_tiles, hidden_tiles); hidden axis is the reduction (last).

    Per step: h = x_bf16 @ [W1_j | W3_j]  (one wide bf16 MXU matmul, fp32 acc),
    fp32 SiLU gate, partial = gated @ W2_j accumulated into a fp32 VMEM scratch.
    Output written once, on the last hidden tile.
    """
    j = pl.program_id(1)
    th = w2_ref.shape[0]                                   # hidden tile size

    @pl.when(j == 0)
    def _cache_x():                                        # cast x once per m-tile
        xbf_ref[...] = x_ref[...].astype(xbf_ref.dtype)

    h = jnp.dot(xbf_ref[...], w13_ref[...],
                preferred_element_type=jnp.float32)        # (bm, 2*th) fp32
    h1 = h[:, :th]
    h3 = h[:, th:]
    # SiLU in fp32; sigmoid via exp (EUP) + approx reciprocal (EUP) -> no VPU divide.
    gated = (h1 * pl.reciprocal(1.0 + jnp.exp(-h1), approx=True)) * h3
    partial = jnp.dot(gated.astype(w2_ref.dtype), w2_ref[...],
                      preferred_element_type=jnp.float32)  # (bm, dim) fp32

    @pl.when(j == 0)
    def _write():                                          # avoid zero-init + RMW
        acc_ref[...] = partial

    @pl.when(j > 0)
    def _accum():
        acc_ref[...] += partial

    @pl.when(j == pl.num_programs(1) - 1)
    def _finalize():
        # dropout p = 0.0 -> identity (inference semantics).
        # TODO(synk): training dropout would need pltpu.prng_seed/prng_random_bits mask.
        o_ref[...] = acc_ref[...].astype(o_ref.dtype)


def prepare_ffn_weights(w1, w2, w3, *, block_h=None, dtype=jnp.bfloat16):
    """One-time weight prep (keep OUT of the per-token hot path).

    w1, w3: (hidden, dim); w2: (dim, hidden)  -- PyTorch (out, in) layout.
    Returns (w13, w2t, block_h):
      w13 : (dim, 2*hidden), interleaved per hidden tile [W1_0|W3_0|W1_1|W3_1|...]
            so one BlockSpec column block j yields both gate and up projections.
      w2t : (hidden, dim).
    The returned block_h must be the one passed to ffn_apply.
    """
    hidden, dim = w1.shape
    if block_h is None:
        block_h = choose_block_h(dim, hidden)
    assert block_h % 128 == 0, "block_h must be a multiple of 128"
    assert hidden % block_h == 0, "block_h must divide hidden_dim"
    nb = hidden // block_h
    w1t = w1.T.astype(dtype)                               # (dim, hidden)
    w3t = w3.T.astype(dtype)
    w13 = jnp.concatenate(
        [w1t.reshape(dim, nb, block_h), w3t.reshape(dim, nb, block_h)],
        axis=-1).reshape(dim, 2 * hidden)
    w2t = w2.T.astype(dtype)                               # (hidden, dim)
    return w13, w2t, block_h


@functools.partial(jax.jit, static_argnames=("block_m", "block_h"))
def ffn_apply(x, w13, w2t, *, block_m=512, block_h=512):
    """x: (..., dim) -> (..., dim). Weights come from prepare_ffn_weights(block_h=...)."""
    orig_shape = x.shape
    dim = orig_shape[-1]
    hidden = w2t.shape[0]
    assert w13.shape == (dim, 2 * hidden)
    assert dim % 128 == 0, "dim must be a multiple of 128 (lane-dense tiles/output)"
    assert block_h % 128 == 0, "block_h must be a multiple of 128"
    assert hidden % block_h == 0, "block_h must divide hidden_dim"
    n_h = hidden // block_h

    xm = x.reshape(-1, dim)                                # (M, dim) token rows
    M = xm.shape[0]

    # Large token tile for MXU utilization / arithmetic intensity; clamp for tiny M.
    sub = 16 if x.dtype == jnp.bfloat16 else 8
    bm = min(_round_up(block_m, sub), _round_up(M, sub))
    m_pad = _round_up(M, bm)
    if m_pad != M:
        xm = jnp.pad(xm, ((0, m_pad - M), (0, 0)))

    x_bytes = jnp.dtype(x.dtype).itemsize
    w_bytes = jnp.dtype(w13.dtype).itemsize
    cost = pl.CostEstimate(
        flops=6 * m_pad * dim * hidden,
        transcendentals=m_pad * hidden,
        bytes_accessed=(2 * m_pad * dim * x_bytes
                        + (m_pad // bm) * 3 * dim * hidden * w_bytes),
    )

    out = pl.pallas_call(
        _ffn_kernel,
        out_shape=jax.ShapeDtypeStruct((m_pad, dim), x.dtype),
        grid=(m_pad // bm, n_h),
        in_specs=[
            pl.BlockSpec((bm, dim), lambda i, j: (i, 0)),            # x tile
            pl.BlockSpec((dim, 2 * block_h), lambda i, j: (0, j)),   # [W1_j | W3_j]
            pl.BlockSpec((block_h, dim), lambda i, j: (j, 0)),       # W2_j
        ],
        out_specs=pl.BlockSpec((bm, dim), lambda i, j: (i, 0)),
        scratch_shapes=[
            pltpu.VMEM((bm, dim), jnp.float32),     # fp32 accumulator
            pltpu.VMEM((bm, dim), jnp.bfloat16),    # cached bf16 x (filled at j == 0)
        ],
        compiler_params=pltpu.CompilerParams(
            dimension_semantics=("parallel", "arbitrary"),
            vmem_limit_bytes=_vmem_limit_bytes(),
        ),
        cost_estimate=cost,
    )(xm, w13, w2t)

    return out[:M].reshape(orig_shape)


def _reference(x, w1, w2, w3):
    """Pure-JAX fp32 reference matching the PyTorch forward (dropout p=0)."""
    h1 = x @ w1.T
    h3 = x @ w3.T
    return (jax.nn.silu(h1) * h3) @ w2.T


if __name__ == "__main__":
    # LMConfig-style config (hidden_dim=None path), sized lane-dense:
    #   dim=128, multiple_of=64 -> hidden_dim = 64*ceil(int(2*4*128/3)/64) = 384
    batch, seq, dim, multiple_of = 2, 8, 128, 64
    hidden_dim = 4 * dim
    hidden_dim = int(2 * hidden_dim / 3)
    hidden_dim = multiple_of * ((hidden_dim + multiple_of - 1) // multiple_of)

    key = jax.random.PRNGKey(0)
    kx, k1, k2, k3 = jax.random.split(key, 4)

    x = jax.random.normal(kx, (batch, seq, dim), dtype=jnp.float32)
    # PyTorch nn.Linear weight layout: (out_features, in_features).
    w1 = jax.random.normal(k1, (hidden_dim, dim), dtype=jnp.float32) * 0.05
    w2 = jax.random.normal(k2, (dim, hidden_dim), dtype=jnp.float32) * 0.05
    w3 = jax.random.normal(k3, (hidden_dim, dim), dtype=jnp.float32) * 0.05

    # block_h=128 -> 384/128 = 3 hidden tiles, exercising the accumulator path.
    # (Production would use block_h=None -> choose_block_h for the chip/dim.)
    w13, w2t, block_h = prepare_ffn_weights(w1, w2, w3, block_h=128)

    out = ffn_apply(x, w13, w2t, block_m=512, block_h=block_h)
    out = jax.block_until_ready(out)

    ref = _reference(x, w1, w2, w3)
    assert out.shape == x.shape and out.dtype == x.dtype
    max_err = float(jnp.max(jnp.abs(out - ref)))
    assert jnp.allclose(out, ref, atol=2e-2, rtol=2e-2), (
        f"mismatch vs reference (bf16 matmul path), max abs err = {max_err}")

    print("KERNEL_OK")
</pallas_src>

<mosaic_0001>
module attributes {stable_mosaic.version = 11 : i64} {
  func.func @_ffn_kernel(%arg0: i32, %arg1: i32, %arg2: memref<16x128xf32, #tpu.memory_space<vmem>>, %arg3: memref<128x256xbf16, #tpu.memory_space<vmem>>, %arg4: memref<128x128xbf16, #tpu.memory_space<vmem>>, %arg5: memref<16x128xf32, #tpu.memory_space<vmem>>, %arg6: memref<16x128xf32, #tpu.memory_space<vmem>>, %arg7: memref<16x128xbf16, #tpu.memory_space<vmem>>) attributes {dimension_semantics = [#tpu.dimension_semantics<parallel>, #tpu.dimension_semantics<arbitrary>], iteration_bounds = array<i64: 1, 3>, scalar_prefetch = 0 : i64, scratch_operands = 2 : i64, tpu.core_type = #tpu.core_type<tc>, window_params = [{transform_indices = @transform_0, window_bounds = array<i64: 16, 128>}, {transform_indices = @transform_1, window_bounds = array<i64: 128, 256>}, {transform_indices = @transform_2, window_bounds = array<i64: 128, 128>}, {transform_indices = @transform_3, window_bounds = array<i64: 16, 128>}]} {
    %c0_i32 = arith.constant 0 : i32
    %0 = arith.cmpi eq, %arg1, %c0_i32 : i32
    %1 = arith.extui %0 : i1 to i32
    %c0_i32_0 = arith.constant 0 : i32
    %2 = arith.cmpi ne, %1, %c0_i32_0 : i32
    scf.if %2 {
      %c0_14 = arith.constant 0 : index
      %c0_15 = arith.constant 0 : index
      %28 = vector.load %arg2[%c0_14, %c0_15] : memref<16x128xf32, #tpu.memory_space<vmem>>, vector<16x128xf32>
      %29 = arith.truncf %28 : vector<16x128xf32> to vector<16x128xbf16>
      %c0_16 = arith.constant 0 : index
      %c0_17 = arith.constant 0 : index
      %30 = vector.load %arg7[%c0_16, %c0_17] : memref<16x128xbf16, #tpu.memory_space<vmem>>, vector<16x128xbf16>
      tpu.vector_store %arg7[%c0_16, %c0_17], %29 {strides = array<i32>} : memref<16x128xbf16, #tpu.memory_space<vmem>>, vector<16x128xbf16>,
    } else {
    }
    %c0 = arith.constant 0 : index
    %c0_1 = arith.constant 0 : index
    %3 = vector.load %arg7[%c0, %c0_1] : memref<16x128xbf16, #tpu.memory_space<vmem>>, vector<16x128xbf16>
    %c0_2 = arith.constant 0 : index
    %c0_3 = arith.constant 0 : index
    %4 = vector.load %arg3[%c0_2, %c0_3] : memref<128x256xbf16, #tpu.memory_space<vmem>>, vector<128x256xbf16>
    %cst = arith.constant dense<0.000000e+00> : vector<16x256xf32>
    %5 = tpu.matmul %3, %4, %cst {dimension_numbers = #tpu.dot_dimension_numbers<[1], [0], [0], [1], [0, 0, 1, 1], [], []>} : vector<16x128xbf16>, vector<128x256xbf16>, vector<16x256xf32> -> vector<16x256xf32>
    %6 = vector.extract_strided_slice %5 {offsets = [0, 0], sizes = [16, 128], strides = [1, 1]} : vector<16x256xf32> to vector<16x128xf32>
    %7 = vector.extract_strided_slice %5 {offsets = [0, 128], sizes = [16, 128], strides = [1, 1]} : vector<16x256xf32> to vector<16x128xf32>
    %cst_4 = arith.constant 0.000000e+00 : f32
    %8 = vector.broadcast %cst_4 : f32 to vector<16x128xf32>
    %9 = arith.subf %8, %6 : vector<16x128xf32>
    %10 = math.exp %9 : vector<16x128xf32>
    %cst_5 = arith.constant 1.000000e+00 : f32
    %11 = vector.broadcast %cst_5 : f32 to vector<16x128xf32>
    %12 = arith.addf %11, %10 : vector<16x128xf32>
    %13 = tpu.reciprocal %12 {approx = true} : vector<16x128xf32> -> vector<16x128xf32>
    %14 = arith.mulf %6, %13 : vector<16x128xf32>
    %15 = arith.mulf %14, %7 : vector<16x128xf32>
    %16 = arith.truncf %15 : vector<16x128xf32> to vector<16x128xbf16>
    %c0_6 = arith.constant 0 : index
    %c0_7 = arith.constant 0 : index
    %17 = vector.load %arg4[%c0_6, %c0_7] : memref<128x128xbf16, #tpu.memory_space<vmem>>, vector<128x128xbf16>
    %cst_8 = arith.constant dense<0.000000e+00> : vector<16x128xf32>
    %18 = tpu.matmul %16, %17, %cst_8 {dimension_numbers = #tpu.dot_dimension_numbers<[1], [0], [0], [1], [0, 0, 1, 1], [], []>} : vector<16x128xbf16>, vector<128x128xbf16>, vector<16x128xf32> -> vector<16x128xf32>
    %c0_i32_9 = arith.constant 0 : i32
    %19 = arith.cmpi eq, %arg1, %c0_i32_9 : i32
    %20 = arith.extui %19 : i1 to i32
    %c0_i32_10 = arith.constant 0 : i32
    %21 = arith.cmpi ne, %20, %c0_i32_10 : i32
    scf.if %21 {
      %c0_14 = arith.constant 0 : index
      %c0_15 = arith.constant 0 : index
      %28 = vector.load %arg6[%c0_14, %c0_15] : memref<16x128xf32, #tpu.memory_space<vmem>>, vector<16x128xf32>
      tpu.vector_store %arg6[%c0_14, %c0_15], %18 {strides = array<i32>} : memref<16x128xf32, #tpu.memory_space<vmem>>, vector<16x128xf32>,
    } else {
    }
    %c0_i32_11 = arith.constant 0 : i32
    %22 = arith.cmpi sgt, %arg1, %c0_i32_11 : i32
    %23 = arith.extui %22 : i1 to i32
    %c0_i32_12 = arith.constant 0 : i32
    %24 = arith.cmpi ne, %23, %c0_i32_12 : i32
    scf.if %24 {
      %c0_14 = arith.constant 0 : index
      %c0_15 = arith.constant 0 : index
      %28 = vector.load %arg6[%c0_14, %c0_15] : memref<16x128xf32, #tpu.memory_space<vmem>>, vector<16x128xf32>
      %29 = arith.addf %28, %18 : vector<16x128xf32>
      %c0_16 = arith.constant 0 : index
      %c0_17 = arith.constant 0 : index
      %30 = vector.load %arg6[%c0_16, %c0_17] : memref<16x128xf32, #tpu.memory_space<vmem>>, vector<16x128xf32>
      tpu.vector_store %arg6[%c0_16, %c0_17], %29 {strides = array<i32>} : memref<16x128xf32, #tpu.memory_space<vmem>>, vector<16x128xf32>,
    } else {
    }
    %c2_i32 = arith.constant 2 : i32
    %25 = arith.cmpi eq, %arg1, %c2_i32 : i32
    %26 = arith.extui %25 : i1 to i32
    %c0_i32_13 = arith.constant 0 : i32
    %27 = arith.cmpi ne, %26, %c0_i32_13 : i32
    scf.if %27 {
      %c0_14 = arith.constant 0 : index
      %c0_15 = arith.constant 0 : index
      %28 = vector.load %arg6[%c0_14, %c0_15] : memref<16x128xf32, #tpu.memory_space<vmem>>, vector<16x128xf32>
      %c0_16 = arith.constant 0 : index
      %c0_17 = arith.constant 0 : index
      %29 = vector.load %arg5[%c0_16, %c0_17] : memref<16x128xf32, #tpu.memory_space<vmem>>, vector<16x128xf32>
      tpu.vector_store %arg5[%c0_16, %c0_17], %28 {strides = array<i32>} : memref<16x128xf32, #tpu.memory_space<vmem>>, vector<16x128xf32>,
    } else {
    }
    return
  }
  func.func @transform_0(%arg0: i32, %arg1: i32) -> (i32, i32) {
    %c0_i32 = arith.constant 0 : i32
    %c0_i32_0 = arith.constant 0 : i32
    return %arg0, %c0_i32 : i32, i32
  }
  func.func @transform_1(%arg0: i32, %arg1: i32) -> (i32, i32) {
    %c0_i32 = arith.constant 0 : i32
    %c0_i32_0 = arith.constant 0 : i32
    return %c0_i32, %arg1 : i32, i32
  }
  func.func @transform_2(%arg0: i32, %arg1: i32) -> (i32, i32) {
    %c0_i32 = arith.constant 0 : i32
    %c0_i32_0 = arith.constant 0 : i32
    return %arg1, %c0_i32 : i32, i32
  }
  func.func @transform_3(%arg0: i32, %arg1: i32) -> (i32, i32) {
    %c0_i32 = arith.constant 0 : i32
    %c0_i32_0 = arith.constant 0 : i32
    return %arg0, %c0_i32 : i32, i32
  }
}

</mosaic_0001>

<bundles_post_ra>
// kernel: ffn_apply.1
= control target key start
LH: loop header
LB: loop body
LE: loop exit
PB: predicated region body
PF: predicated region fallthrough
CT: control target
= control target key end

     0   :  { %8 = vsyncpa [#allocation5], 0  ;;  %s1287_s0 = inlined_call_operand.hbm [shape: f32[16,128], index: 0, kind: input, shape index: {}]   ;;  %s1288_s1 = inlined_call_operand.hbm [shape: bf16[128,768], index: 1, kind: input, shape index: {}]   ;;  %s1289_s2 = inlined_call_operand.hbm [shape: bf16[384,128], index: 2, kind: input, shape index: {}]   ;;  %s1290_s3 = inlined_call_operand.hbm [shape: f32[16,128], index: 3, kind: output, shape index: {}]  }
   0x1   :  { %9 = vsyncpa [#allocation8], 0 }
   0x2   :  { %11 = vsyncpa [#allocation8 + $0x1], 0 }
   0x3   :  { %12 = vsyncpa [#allocation6], 0  ;;  %s1088_s12 = smov 0   ;;  %s1090_s13 = smov 0  }
   0x4   :  { %s1092_s14 = smov 0   ;;  %s1094_s15 = smov 0  }
   0x5   :  { %s1096_s16 = smov 0   ;;  %s1098_s17 = smov 0  }
   0x6 LB: > { %s27_s18 = sadd.s32 1, %s1048_s16  ;;  %s63_s19 = sadd.s32 1, %s1040_s14  ;;  %s1052_s17 = sphi %s1098_s17, %s18_s17   ;;  %s1048_s16 = sphi %s1096_s16, %s1301_s16   ;;  %s1044_s15 = sphi %s1094_s15, %s1300_s15   ;;  %s1040_s14 = sphi %s1092_s14, %s1299_s14   ;;  %s1036_s13 = sphi %s1090_s13, %s1298_s13   ;;  %s1032_s12 = sphi %s1088_s12, %s1297_s12  }
   0x7   : > { %p28_p0 = scmp.ge.s32.totalorder %s27_s18, 3  ;;  %p70_p1 = scmp.ne.s32.totalorder %s1040_s14, %s1036_s13 }
   0x8   : > { %p71_p2 = scmp.eq.s32.totalorder %s1052_s17, 0  ;;  %p783_p5 = scmp.lt.s32.totalorder %s1052_s17, 3 }
   0x9   : > { %s1303_s18 = smov (%p28_p0, %s27_s18), 0  ;;  %s168_s22 = sand.u32 1, %s1052_s17  }
   0xa   : > { %p1125_p3 = por %p71_p2, %p70_p1  ;;  %s60_s21 = ssub.s32 %s1048_s16, %s1303_s18 }
   0xb   : > { %p61_p4 = scmp.eq.s32.totalorder %s60_s21, 0  ;;  %s170_s23 = sand.u32 1, %s1040_s14  }
   0xc   : > { %s676_s25 = sshll.u32 %s170_s23, 7  ;;  %s721_s26 = sshll.u32 %s1048_s16, 7 }
   0xd   : > { %s1135_s24 = scalar_select %p61_p4, %s1040_s14, %s63_s19  }
   0xe   : > { %s178_s29 = scalar_lea.hbm %s1288_s1, %s721_s26  ;;  %s172_s30 = scalar_lea.vmem [#allocation7], %s676_s25 }
   0xf   : > { %s179_s4 = sshll.u32 %s172_s30, 4  ;;  %p1145_p6 = pnand %p783_p5, %p1125_p3  ;;  %s180_s4 = int_to_ptr.vmem [resolvable:$true] %s179_s4 }
  0x10   : > { %s1149_s6 = scalar_lea.sflag [#allocation8], %s168_s22  ;;  %s901_s7 = scalar_lea.vmem %s180_s4, 2048 }
  0x11   : > { %p1291_p7 = pneg %p1145_p6  ;;  %p902_p8 = scmp.ne.s32.totalorder %s180_s4, %s901_s7 }
  0x12   : > { %s1054_s8 = smov [#allocation7]  }
  0x13   : > { %p904_p9 = pnand %p902_p8, %p1291_p7  ;;  %s906_s9 = sshll.u32 %s1054_s8, 4  ;;  %s907_s9 = int_to_ptr.vmem [resolvable:$false] %s906_s9 }
  0x14   : > { %s908_s10 = scalar_lea.vmem %s907_s9, 4096  ;;  %p909_p11 = scmp.lt.s32.totalorder %s180_s4, %s907_s9 }
  0x15   : > { %p905_p10 = pneg %p904_p9  ;;  %p910_p12 = scmp.lt.s32.totalorder %s908_s10, %s901_s7 }
  0x17   : > { %p911_p13 = por %p910_p12, %p909_p11 }
  0x19   : > { %p912_p0 = pnand %p911_p13, %p905_p10 }
  0x1b   : > { %915 = shalt.err (!%p912_p0)
}
  0x1c   : > { %s1055_s11 = smov 384   ;;  %s1056_s19 = smov 128  }
  0x1d   : > { %s1057_s20 = smov 8   ;;  %s1162_s21 = sadd.s32 4294967295, %s1052_s17  }
  0x1e   : > { %778 = dma.hbm_to_vmem [thread:$0]  (!%p1145_p6), %s178_s29, 2048, %s180_s4, %s1149_s6, %s1055_s11, %s1056_s19, %s1057_s20  }
  0x1f   : > { %p76_p1 = scmp.ne.s32.totalorder %s1036_s13, %s1032_s12  ;;  %p77_p2 = scmp.eq.s32.totalorder %s1162_s21, 0 }
  0x20   : > { %p673_p3 = scmp.ge.s32.totalorder %s1052_s17, 1  ;;  %p139_p4 = scmp.lt.s32.totalorder %s1052_s17, 4 }
  0x21   : > { %p1171_p5 = por %p77_p2, %p76_p1  ;;  %s1058_s26 = smov [#allocation4]  }
  0x22   : > { %p1175_p8 = pnand %p673_p3, %p139_p4  ;;  %s154_s27 = sshll.u32 %s1058_s26, 4  ;;  %s155_s27 = int_to_ptr.vmem [resolvable:$true] %s154_s27 }
  0x23   : > { %s679_s28 = sshll.u32 %s170_s23, 6  ;;  %s722_s12 = sshll.u32 %s1048_s16, 10 }
  0x24   : > { %p771_p9 = pneg %p1175_p8  ;;  %s193_s29 = scalar_lea.vmem [#allocation9], %s679_s28 }
  0x25   : > { %s200_s30 = sshll.u32 %s193_s29, 4  ;;  %s1189_s8 = scalar_lea.hbm %s1289_s2, %s722_s12  ;;  %s1191_s30 = int_to_ptr.vmem [resolvable:$true] %s200_s30 }
  0x26   : > { %p772_p10 = pnand %p771_p9, %p77_p2  ;;  %s927_s9 = scalar_lea.vmem %s155_s27, 256 }
  0x27   : > { %p928_p12 = scmp.ne.s32.totalorder %s155_s27, %s927_s9  ;;  %p935_p1 = scmp.lt.s32.totalorder %s155_s27, %s155_s27 }
  0x28   : > { %p918_p11 = pneg %p772_p10  ;;  %p936_p3 = scmp.lt.s32.totalorder %s927_s9, %s927_s9 }
  0x2a   : > { %p930_p13 = pnand %p928_p12, %p918_p11  ;;  %p937_p4 = por %p936_p3, %p935_p1 }
  0x2c   : > { %p931_p0 = pneg %p930_p13 }
  0x2e   : > { %p938_p7 = pnand %p937_p4, %p931_p0 }
  0x30   : > { %941 = shalt.err (!%p938_p7)
}
  0x31   : > { %774 = dma.hbm_to_vmem [thread:$0]  (!%p772_p10), %s1287_s0, 256, %s155_s27, [#allocation5], %s1056_s19, %s1056_s19, %s1057_s20  }
  0x32   : > { %s955_s11 = scalar_lea.vmem %s1191_s30, 1024  ;;  %p1296_p11 = pneg %p1145_p6 }
  0x33   : > { %p956_p9 = scmp.ne.s32.totalorder %s1191_s30, %s955_s11  ;;  %s1059_s26 = smov [#allocation9]  }
  0x34   : > { %s960_s28 = sshll.u32 %s1059_s26, 4  ;;  %s961_s28 = int_to_ptr.vmem [resolvable:$false] %s960_s28 }
  0x35   : > { %p958_p12 = pnand %p956_p9, %p1296_p11  ;;  %s962_s12 = scalar_lea.vmem %s961_s28, 2048 }
  0x36   : > { %p963_p7 = scmp.lt.s32.totalorder %s1191_s30, %s961_s28  ;;  %p964_p0 = scmp.lt.s32.totalorder %s962_s12, %s955_s11 }
  0x37   : > { %p959_p13 = pneg %p958_p12 }
  0x38   : > { %p965_p1 = por %p964_p0, %p963_p7 }
  0x3a   : > { %p966_p3 = pnand %p965_p1, %p959_p13 }
  0x3c   : > { %969 = shalt.err (!%p966_p3)
}
  0x3d   : > { %s1060_s29 = smov 64   ;;  %s1061_s19 = smov 4  }
  0x3e   : > { %781 = dma.hbm_to_vmem [thread:$0]  (!%p1145_p6), %s1189_s8, 1024, %s1191_s30, %s1149_s6, %s1060_s29, %s1060_s29, %s1061_s19  }
  0x3f   : > { %212 = sbr.rel (%p1175_p8) target bundleno = 590 (0x24e), region = 32 }
  0x44   : > { %1019 = dma.done.wait (%p77_p2), [#allocation5], 256  }
  0x45   : > { %1021 = vsyncadd (%p77_p2), [#allocation5], 4294967040  ;;  %s218_s20 = sand.u32 1, %s1162_s21   ;;  %s220_s27 = sand.u32 1, %s1036_s13  }
  0x46   : > { %s684_s4 = sshll.u32 %s220_s27, 7  ;;  %s219_s7 = scalar_lea.sflag [#allocation8], %s218_s20 }
  0x47   : > { %s1218_s9 = scalar_lea.vmem [#allocation7], %s684_s4 }
  0x48   : > { %1023 = dma.done.wait (%p1171_p5), %s219_s7, 3072  }
  0x49   : > { %1025 = vsyncadd (%p1171_p5), %s219_s7, 4294964224  ;;  %s685_s5 = sshll.u32 %s220_s27, 6  ;;  %p686_p6 = scmp.ne.s32.totalorder %s1044_s15, 0 }
  0x4a   : > { %s1224_s6 = scalar_lea.vmem [#allocation9], %s685_s5 }
  0x4b   : > { %262 = sbr.rel (%p686_p6) target bundleno = 84 (0x54), region = 48 }
  0x50   : > { %v263_v0 = vld [vmem:[#allocation4] sm:$0xff]  ;;  %v264_v1 = vld [vmem:[#allocation4 + $0x8] sm:$0xff] }
  0x51   : > { %v728_v2 = vpack.c.bf16 %v264_v1, %v263_v0 }
  0x53   : > { %729 = vst [vmem:[#allocation3] sm:$0xff] %v728_v2  }
  0x54 PF: > { %v847_v3 = vld [vmem:[%s1218_s9 + $0x74] ss:$8 sps:$4 sm:$0xff]   ;;  %v849_v4 = vld [vmem:[%s1218_s9 + $0x70] ss:$8 sps:$4 sm:$0xff]   ;;  %v1062_v5 = vmov 0   ;;  %v1063_v22 = vmov 0.0  }
  0x55   : > { %411 = vmatprep.mubr.bf16.mxu0 %v1062_v5  ;;  %379 = vmatprep.subr.bf16.mxu0 %v847_v3  ;;  %v850_v6 = vld [vmem:[%s1218_s9 + $0x64] ss:$8 sps:$4 sm:$0xff]   ;;  %v852_v7 = vld [vmem:[%s1218_s9 + $0x60] ss:$8 sps:$4 sm:$0xff]   ;;  %v853_v8 = vld [vmem:[%s1218_s9 + $0x54] ss:$8 sps:$4 sm:$0xff]  }
  0x56   : > { %380 = vmatpush1.bf16.msra.mxu0 %v849_v4  ;;  %v855_v9 = vld [vmem:[%s1218_s9 + $0x50] ss:$8 sps:$4 sm:$0xff]   ;;  %v856_v10 = vld [vmem:[%s1218_s9 + $0x44] ss:$8 sps:$4 sm:$0xff]   ;;  %v858_v11 = vld [vmem:[%s1218_s9 + $0x40] ss:$8 sps:$4 sm:$0xff]   ;;  %739 = vmatprep.subr.bf16.mxu1 %v1063_v22 }
  0x57   : > { %381 = vmatprep.subr.bf16.mxu0 %v850_v6  ;;  %v859_v12 = vld [vmem:[%s1218_s9 + $0x34] ss:$8 sps:$4 sm:$0xff]   ;;  %v861_v13 = vld [vmem:[%s1218_s9 + $0x30] ss:$8 sps:$4 sm:$0xff]   ;;  %v862_v14 = vld [vmem:[%s1218_s9 + $0x24] ss:$8 sps:$4 sm:$0xff]  }
  0x58   : > { %v864_v15 = vld [vmem:[%s1218_s9 + $0x20] ss:$8 sps:$4 sm:$0xff]   ;;  %v865_v16 = vld [vmem:[%s1218_s9 + $0x14] ss:$8 sps:$4 sm:$0xff]   ;;  %v867_v17 = vld [vmem:[%s1218_s9 + $0x10] ss:$8 sps:$4 sm:$0xff]  }
  0x59   : > { %v868_v18 = vld [vmem:[%s1218_s9 + $0x4] ss:$8 sps:$4 sm:$0xff]   ;;  %v870_v19 = vld [vmem:[%s1218_s9] ss:$8 sps:$4 sm:$0xff]   ;;  %v872_v21 = vld [vmem:[%s1224_s6 + $0x38] sm:$0xff]   ;;  %vm1064_vm0 = vmmov 0  }
  0x5a   : > { %382 = vmatpush1.bf16.msra.mxu0 %v852_v7  ;;  %v871_v20 = vld [vmem:[#allocation3] sm:$0xff]   ;;  %740 = vmatpush3.bf16.msra.mxu1 %v872_v21  ;;  %v873_v23 = vld [vmem:[%s1224_s6 + $0x30] sm:$0xff]   ;;  %v875_v25 = vld [vmem:[%s1224_s6 + $0x20] sm:$0xff]  }
  0x5b   : > { %383 = vmatprep.subr.bf16.mxu0 %v853_v8  ;;  %741 = vmatprep.subr.bf16.mxu1 %v1063_v22  ;;  %v874_v24 = vld [vmem:[%s1224_s6 + $0x28] sm:$0xff]   ;;  %v876_v26 = vld [vmem:[%s1224_s6 + $0x18] sm:$0xff]   ;;  %v877_v27 = vld [vmem:[%s1224_s6 + $0x10] sm:$0xff]  }
  0x5c   : > { %v878_v28 = vld [vmem:[%s1224_s6 + $0x8] sm:$0xff]   ;;  %v879_v29 = vld [vmem:[%s1224_s6] sm:$0xff]   ;;  %755 = vmatprep.mubr.msk.bf16.mxu1 %vm1064_vm0, %v1063_v22 }
  0x5e   : > { %384 = vmatpush1.bf16.msra.mxu0 %v855_v9  ;;  %742 = vmatpush3.bf16.msra.mxu1 %v873_v23 }
  0x5f   : > { %385 = vmatprep.subr.bf16.mxu0 %v856_v10  ;;  %743 = vmatprep.subr.bf16.mxu1 %v1063_v22 }
  0x62   : > { %386 = vmatpush1.bf16.msra.mxu0 %v858_v11  ;;  %744 = vmatpush3.bf16.msra.mxu1 %v874_v24 }
  0x63   : > { %387 = vmatprep.subr.bf16.mxu0 %v859_v12  ;;  %745 = vmatprep.subr.bf16.mxu1 %v1063_v22 }
  0x66   : > { %388 = vmatpush1.bf16.msra.mxu0 %v861_v13  ;;  %746 = vmatpush3.bf16.msra.mxu1 %v875_v25 }
  0x67   : > { %389 = vmatprep.subr.bf16.mxu0 %v862_v14  ;;  %747 = vmatprep.subr.bf16.mxu1 %v1063_v22 }
  0x6a   : > { %390 = vmatpush1.bf16.msra.mxu0 %v864_v15  ;;  %748 = vmatpush3.bf16.msra.mxu1 %v876_v26 }
  0x6b   : > { %391 = vmatprep.subr.bf16.mxu0 %v865_v16  ;;  %749 = vmatprep.subr.bf16.mxu1 %v1063_v22 }
  0x6e   : > { %392 = vmatpush1.bf16.msra.mxu0 %v867_v17  ;;  %750 = vmatpush3.bf16.msra.mxu1 %v877_v27 }
  0x6f   : > { %393 = vmatprep.subr.bf16.mxu0 %v868_v18  ;;  %751 = vmatprep.subr.bf16.mxu1 %v1063_v22 }
  0x72   : > { %394 = vmatpush1.bf16.msra.mxu0 %v870_v19  ;;  %752 = vmatpush3.bf16.msra.mxu1 %v878_v28 }
  0x73   : > { %753 = vmatprep.subr.bf16.mxu1 %v1063_v22 }
  0x75   : > { %412 = vmatmul.mubr.bf16.vlgmr.msra.gmra.mxu0 %v871_v20 }
  0x76   : > { %754 = vmatpush3.bf16.msra.mxu1 %v879_v29 }
 0x135   : > { %v413_v30 = vpop.f32.mrf.mxu0 }
 0x136   : > { %v422_v31 = vsub.f32 0.0, %v413_v30 }
 0x137   : > { %v415_v32 = vpop.f32.mrf.mxu0 }
 0x138   : > { %v424_v33 = vmul.f32 1.442695, %v422_v31 }
 0x139   : > { %v417_v34 = vpop.f32.mrf.mxu0 }
 0x13a   : > { %880 = vpow2.f32 %v424_v33  ;;  %v423_v35 = vsub.f32 0.0, %v417_v34 }
 0x13b   : > { %v419_v45 = vpop.f32.mrf.mxu0 }
 0x13c   : > { %v426_v36 = vmul.f32 1.442695, %v423_v35 }
 0x13e   : > { %882 = vpow2.f32 %v426_v36 }
 0x147   : > { %v881_v37 = vpop.eup %880 }
 0x148   : > { %v428_v38 = vadd.f32 1.0, %v881_v37 }
 0x14a   : > { %884 = vrcp.f32 %v428_v38 }
 0x14b   : > { %v883_v39 = vpop.eup %882 }
 0x14c   : > { %v429_v40 = vadd.f32 1.0, %v883_v39 }
 0x14e   : > { %886 = vrcp.f32 %v429_v40 }
 0x157   : > { %v885_v41 = vpop.eup %884 }
 0x158   : > { %v432_v42 = vmul.f32 %v885_v41, %v413_v30 }
 0x15a   : > { %v434_v46 = vmul.f32 %v432_v42, %v415_v32 }
 0x15b   : > { %v887_v43 = vpop.eup %886 }
 0x15c   : > { %v433_v44 = vmul.f32 %v887_v43, %v417_v34 }
 0x15e   : > { %v435_v47 = vmul.f32 %v433_v44, %v419_v45 }
 0x160   : > { %v436_v48 = vpack.c.bf16 %v435_v47, %v434_v46 }
 0x162   : > { %756 = vmatmul.mubr.bf16.vlgmr.msra.gmra.mxu1 %v436_v48 }
 0x222   : > { %v535_v49 = vpop.f32.mrf.mxu1 }
 0x224   : > { %v757_v50 = vpop.f32.mrf.mxu1  ;;  %544 = sbr.rel (%p686_p6) target bundleno = 554 (0x22a), region = 52 }
 0x226   : > { %v538_v51 = vpop.f32.mrf.mxu1 }
 0x228   : > { %v758_v52 = vpop.f32.mrf.mxu1 }
 0x229   : > { %545 = vst [vmem:[#allocation2] sm:$0xff] %v535_v49  ;;  %546 = vst [vmem:[#allocation2 + $0x8] sm:$0xff] %v538_v51 }
 0x22a PF: > { %p715_p2 = scmp.le.s32.totalorder %s1044_s15, 0 }
 0x22c   : > { %550 = sbr.rel (%p715_p2) target bundleno = 565 (0x235), region = 56 }
 0x231   : > { %v551_v53 = vld [vmem:[#allocation2] sm:$0xff]  ;;  %v552_v54 = vld [vmem:[#allocation2 + $0x8] sm:$0xff] }
 0x232   : > { %v553_v55 = vadd.f32 %v551_v53, %v535_v49  ;;  %v554_v56 = vadd.f32 %v552_v54, %v538_v51 }
 0x234   : > { %555 = vst [vmem:[#allocation2] sm:$0xff] %v553_v55  ;;  %556 = vst [vmem:[#allocation2 + $0x8] sm:$0xff] %v554_v56 }
 0x235 PF: > { %p716_p5 = scmp.ne.s32.totalorder %s1044_s15, 2 }
 0x237   : > { %560 = sbr.rel (%p716_p5) target bundleno = 574 (0x23e), region = 60 }
 0x23c   : > { %v561_v57 = vld [vmem:[#allocation2] sm:$0xff]  ;;  %v562_v58 = vld [vmem:[#allocation2 + $0x8] sm:$0xff] }
 0x23d   : > { %563 = vst [vmem:[#allocation10] sm:$0xff] %v561_v57  ;;  %564 = vst [vmem:[#allocation10 + $0x8] sm:$0xff] %v562_v58 }
 0x23e PF: > { %p785_p8 = scmp.eq.s32.totalorder %s1162_s21, 2  ;;  %s1065_s22 = smov [#allocation10]  }
 0x23f   : > { %s574_s25 = sshll.u32 %s1065_s22, 4  ;;  %s575_s25 = int_to_ptr.vmem [resolvable:$true] %s574_s25 }
 0x240   : > { %s970_s30 = scalar_lea.vmem %s575_s25, 256  ;;  %p977_p11 = scmp.lt.s32.totalorder %s575_s25, %s575_s25 }
 0x241   : > { %p971_p10 = scmp.ne.s32.totalorder %s575_s25, %s970_s30  ;;  %p978_p12 = scmp.lt.s32.totalorder %s970_s30, %s970_s30 }
 0x243   : > { %p972_p4 = pnand %p971_p10, %p785_p8  ;;  %p979_p13 = por %p978_p12, %p977_p11 }
 0x245   : > { %p973_p9 = pneg %p972_p4 }
 0x247   : > { %p980_p7 = pnand %p979_p13, %p973_p9 }
 0x249   : > { %983 = shalt.err (!%p980_p7)
}
 0x24a   : > { %s1066_s15 = smov 128   ;;  %s1067_s8 = smov 8  }
 0x24b   : > { %768 = dma.vmem_to_hbm [thread:$0]  (%p785_p8), %s575_s25, 256, %s1290_s3, [#allocation6], %s1066_s15, %s1066_s15, %s1067_s8  }
 0x24c   : > { %1027 = dma.done.wait (%p785_p8), [#allocation6], 256  }
 0x24d   : > { %1029 = vsyncadd (%p785_p8), [#allocation6], 4294967040 }
 0x24e PF: > { %s18_s17 = sadd.s32 1, %s1052_s17   ;;  %s1297_s12 = smov %s1036_s13 }
 0x24f   : > { %p15_p0 = scmp.ge.s32.totalorder %s18_s17, 5   ;;  %s1298_s13 = smov %s1040_s14 }
 0x250   : > { %s1299_s14 = smov %s1135_s24  ;;  %s1300_s15 = smov %s1048_s16 }
 0x251   : > { %s1301_s16 = smov %s1303_s18  ;;  %17 = sbr.rel (!%p15_p0) target bundleno = 6 (0x6), region = 103 }
 0x256   :  { %590 = vsyncpa [#allocation5], 1 }
 0x257   :  { %592 = vsyncpa [#allocation5 + $0x1], 1 }
 0x258   :  { %593 = vsyncpa [#allocation8], 1 }
 0x259   :  { %595 = vsyncpa [#allocation8 + $0x1], 1 }
 0x25a   :  { %596 = vsyncpa [#allocation6], 1 }
 0x25b   :  { %598 = vsyncpa [#allocation6 + $0x1], 1 }

</bundles_post_ra>
